<compile_context>
chip_gen: v5e
topology: v5e:2x2
jax: 0.10.0
libtpu: 0.0.40
codegen_flags: <defaults>
</compile_context>

<pallas_src>
import functools

import jax
import jax.numpy as jnp
from jax import lax
from jax.experimental import pallas as pl
from jax.experimental.pallas import tpu as pltpu


def _round_up(v, m):
    return (v + m - 1) // m * m


def _ceil_div(a, b):
    return -(-a // b)


# ---------------------------------------------------------------------------
# Kernel: tiled scatter-max over voxel clusters (sorted nodes, chunk skipping).
# ---------------------------------------------------------------------------
def _max_pooling_x_kernel(lo_ref, hi_ref, cluster_ref, x_ref, o_ref, *, k_chunk):
    step = pl.program_id(0)

    @pl.when(step == 0)
    def _init():
        o_ref[...] = jnp.full(o_ref.shape, -jnp.inf, dtype=o_ref.dtype)

    cluster = cluster_ref[...]                    # [tile_rows, P*F] int32 (-1 = pad)
    x = x_ref[...].astype(jnp.float32)            # [tile_rows, P*F] f32 VPU math
    neg_inf = jnp.float32(-jnp.inf)

    lo = lo_ref[step]                             # first active k-chunk of this tile
    hi = hi_ref[step]                             # one past the last active k-chunk

    def chunk_body(c, carry):
        row0 = pl.multiple_of(c * k_chunk, k_chunk)
        rows = []
        for j in range(k_chunk):
            k = c * k_chunk + j
            vals = jnp.where(cluster == k, x, neg_inf)         # VPU select (lane-dense)
            rows.append(jnp.max(vals, axis=0, keepdims=True))  # one XLU reduce per k
        chunk = jnp.concatenate(rows, axis=0)                  # [k_chunk, P*F]
        cur = o_ref[pl.ds(row0, k_chunk), :]
        o_ref[pl.ds(row0, k_chunk), :] = jnp.maximum(cur, chunk)
        return carry

    # Only the k-chunks actually present in this (cluster-sorted) tile are visited.
    lax.fori_loop(lo, hi, chunk_body, None)


# ---------------------------------------------------------------------------
# Wrapper: voxel_grid cluster assignment + sort + lane packing + pallas_call.
# ---------------------------------------------------------------------------
def _voxel_grid_cluster(pos, batch, voxel_size):
    """torch_cluster.grid_cluster semantics: flat voxel id with cumulative strides,
    `batch` appended as a trailing dim of voxel size 1."""
    pos = pos.astype(jnp.float32)
    n, d = pos.shape
    cluster = jnp.zeros((n,), jnp.int32)
    stride = jnp.int32(1)
    for dim in range(d):
        col = pos[:, dim]
        vs = jnp.float32(voxel_size[dim])
        start = jnp.min(col)
        end = jnp.max(col)
        cluster = cluster + ((col - start) / vs).astype(jnp.int32) * stride
        stride = stride * (((end - start) / vs).astype(jnp.int32) + 1)
    return cluster + batch.astype(jnp.int32) * stride


def max_pooling_x(x, pos, batch=None, *, voxel_size, size, num_batches=None,
                  tile_n=2048, k_chunk=8):
    """Pallas implementation of MaxPoolingX.forward(x, pos, batch)."""
    n, f = x.shape
    if batch is None:
        batch = jnp.zeros((n,), jnp.int32)
        num_batches = 1
    assert num_batches is not None

    # Cluster ids need global per-dim min/max -> computed here (XLA-fused, trivial).
    cluster = _voxel_grid_cluster(pos, batch, voxel_size)

    k_total = int(num_batches) * int(size)
    k_pad = _round_up(k_total, k_chunk)
    num_chunks = k_pad // k_chunk

    # Occupancy counts for the empty-cluster -> 0 rule (count-based, so an
    # occupied cluster whose max is legitimately -inf stays -inf).
    valid = (cluster >= 0) & (cluster < k_total)
    counts = jax.ops.segment_sum(valid.astype(jnp.int32),
                                 jnp.where(valid, cluster, 0),
                                 num_segments=k_total)

    # Out-of-range cluster ids are dropped (sentinel -1 never matches any k >= 0).
    cluster = jnp.where(valid, cluster, -1)

    # Sort nodes by cluster id so every tile only spans a narrow k-window.
    perm = jnp.argsort(cluster)
    cluster_s = cluster[perm]
    x_s = x[perm]

    # Lane packing: P consecutive nodes per vreg row when F divides 128.
    p = 128 // f if (f <= 128 and 128 % f == 0) else 1
    n_rows = _ceil_div(n, p)
    tile_rows = max(8, _round_up(_ceil_div(int(tile_n), p), 8))
    tile_rows = min(tile_rows, _round_up(n_rows, 8))
    n_rows_pad = _round_up(n_rows, tile_rows)
    num_tiles = n_rows_pad // tile_rows
    n_pad = n_rows_pad * p
    pad = n_pad - n

    cluster_p = jnp.pad(cluster_s, (0, pad), constant_values=-1)
    x_p = jnp.pad(x_s, ((0, pad), (0, 0)))

    # Packed, lane-dense layouts: features [rows, P*F]; cluster ids lane-repeated
    # F times so the per-element equality mask lines up with x.
    x_packed = x_p.reshape(n_rows_pad, p * f)
    cluster_packed = jnp.broadcast_to(
        cluster_p.reshape(n_rows_pad, p, 1), (n_rows_pad, p, f)
    ).reshape(n_rows_pad, p * f).astype(jnp.int32)

    # Per-tile active chunk window [lo, hi), scalar-prefetched into SMEM.
    cl_tiles = cluster_p.reshape(num_tiles, tile_rows * p)
    tile_valid = cl_tiles >= 0
    c_idx = cl_tiles // k_chunk
    chunk_lo = jnp.min(jnp.where(tile_valid, c_idx, num_chunks), axis=1)
    chunk_hi = jnp.max(jnp.where(tile_valid, c_idx + 1, 0), axis=1)
    chunk_lo = jnp.minimum(chunk_lo, chunk_hi).astype(jnp.int32)
    chunk_hi = chunk_hi.astype(jnp.int32)

    kernel = functools.partial(_max_pooling_x_kernel, k_chunk=int(k_chunk))

    out_packed = pl.pallas_call(
        kernel,
        out_shape=jax.ShapeDtypeStruct((k_pad, p * f), jnp.float32),
        grid_spec=pltpu.PrefetchScalarGridSpec(
            num_scalar_prefetch=2,                 # chunk_lo, chunk_hi -> SMEM
            grid=(num_tiles,),
            in_specs=[pl.BlockSpec((tile_rows, p * f), lambda i, lo, hi: (i, 0)),
                      pl.BlockSpec((tile_rows, p * f), lambda i, lo, hi: (i, 0))],
            out_specs=pl.BlockSpec((k_pad, p * f), lambda i, lo, hi: (0, 0)),
        ),
        compiler_params=pltpu.CompilerParams(
            dimension_semantics=("arbitrary",),    # reduction over node tiles
        ),
    )(chunk_lo, chunk_hi, cluster_packed, x_packed)

    # Fold the P packed partial maxima per cluster, mask empty clusters to 0.
    out = jnp.max(out_packed.reshape(k_pad, p, f), axis=1)[:k_total]
    out = jnp.where(counts[:, None] > 0, out, jnp.float32(0)).astype(x.dtype)
    return out


# ---------------------------------------------------------------------------
# Pure-JAX reference mirroring torch_geometric semantics.
# ---------------------------------------------------------------------------
def _reference_forward(x, pos, batch, voxel_size, size, num_batches):
    cluster = _voxel_grid_cluster(pos, batch, voxel_size)
    k_total = num_batches * size
    seg = jax.ops.segment_max(x, cluster, num_segments=k_total)
    cnt = jax.ops.segment_sum(jnp.ones((x.shape[0],), jnp.float32), cluster,
                              num_segments=k_total)
    return jnp.where(cnt[:, None] > 0, seg, jnp.zeros_like(seg))


if __name__ == "__main__":
    key = jax.random.PRNGKey(0)
    kx, kp = jax.random.split(key, 2)

    N, F, D = 64, 32, 2          # nodes, feature dim, spatial dims
    B, SIZE = 2, 16              # batches, clusters per example (4x4 voxel grid)
    VOXEL_SIZE = (4.0, 4.0)      # spatial extent 16 -> 4 voxels per dim

    x = jax.random.normal(kx, (N, F), dtype=jnp.float32)
    pos = jax.random.uniform(kp, (N, D), dtype=jnp.float32, minval=0.0, maxval=16.0)
    batch = jnp.repeat(jnp.arange(B, dtype=jnp.int32), N // B)

    out = max_pooling_x(x, pos, batch, voxel_size=VOXEL_SIZE, size=SIZE,
                        num_batches=B)
    out = jax.block_until_ready(out)

    ref = _reference_forward(x, pos, batch, VOXEL_SIZE, SIZE, B)
    assert out.shape == (B * SIZE, F), out.shape
    assert jnp.allclose(out, ref, atol=1e-6), "mismatch vs reference"
    print("KERNEL_OK")
</pallas_src>

<mosaic_0001>
module attributes {stable_mosaic.version = 11 : i64} {
  func.func @_max_pooling_x_kernel(%arg0: i32, %arg1: memref<1xi32, #tpu.memory_space<smem>>, %arg2: memref<1xi32, #tpu.memory_space<smem>>, %arg3: memref<16x128xi32, #tpu.memory_space<vmem>>, %arg4: memref<16x128xf32, #tpu.memory_space<vmem>>, %arg5: memref<32x128xf32, #tpu.memory_space<vmem>>) attributes {dimension_semantics = [#tpu.dimension_semantics<arbitrary>], iteration_bounds = array<i64: 1>, scalar_prefetch = 2 : i64, scratch_operands = 0 : i64, tpu.core_type = #tpu.core_type<tc>, window_params = [{transform_indices = @transform_0, window_bounds = array<i64: 16, 128>}, {transform_indices = @transform_1, window_bounds = array<i64: 16, 128>}, {pipeline_mode = #tpu.pipeline_mode<synchronous>, transform_indices = @transform_2, window_bounds = array<i64: 32, 128>}]} {
    %c0_i32 = arith.constant 0 : i32
    %0 = arith.cmpi eq, %arg0, %c0_i32 : i32
    %1 = arith.extui %0 : i1 to i32
    %c0_i32_0 = arith.constant 0 : i32
    %2 = arith.cmpi ne, %1, %c0_i32_0 : i32
    scf.if %2 {
      %cst_4 = arith.constant 0xFF800000 : f32
      %11 = vector.broadcast %cst_4 : f32 to vector<32x128xf32>
      %c0_5 = arith.constant 0 : index
      %c0_6 = arith.constant 0 : index
      %12 = vector.load %arg5[%c0_5, %c0_6] : memref<32x128xf32, #tpu.memory_space<vmem>>, vector<32x128xf32>
      tpu.vector_store %arg5[%c0_5, %c0_6], %11 {strides = array<i32>} : memref<32x128xf32, #tpu.memory_space<vmem>>, vector<32x128xf32>,
    } else {
    }
    %c0 = arith.constant 0 : index
    %c0_1 = arith.constant 0 : index
    %3 = vector.load %arg3[%c0, %c0_1] : memref<16x128xi32, #tpu.memory_space<vmem>>, vector<16x128xi32>
    %c0_2 = arith.constant 0 : index
    %c0_3 = arith.constant 0 : index
    %4 = vector.load %arg4[%c0_2, %c0_3] : memref<16x128xf32, #tpu.memory_space<vmem>>, vector<16x128xf32>
    %5 = arith.index_cast %arg0 : i32 to index
    %6 = memref.load %arg1[%5] : memref<1xi32, #tpu.memory_space<smem>>
    %7 = arith.index_cast %arg0 : i32 to index
    %8 = memref.load %arg2[%7] : memref<1xi32, #tpu.memory_space<smem>>
    %cst = arith.constant 0xFF800000 : f32
    %9 = arith.subi %8, %6 : i32
    %10 = arith.addi %6, %9 : i32
    %c1_i32 = arith.constant 1 : i32
    scf.for %arg6 = %6 to %10 step %c1_i32  : i32 {
      %c8_i32 = arith.constant 8 : i32
      %11 = arith.muli %arg6, %c8_i32 : i32
      %12 = tpu.assume_multiple %11, 8 : i32
      %c8_i32_4 = arith.constant 8 : i32
      %13 = arith.muli %arg6, %c8_i32_4 : i32
      %c0_i32_5 = arith.constant 0 : i32
      %14 = arith.addi %13, %c0_i32_5 : i32
      %15 = vector.broadcast %14 : i32 to vector<16x128xi32>
      %16 = arith.cmpi eq, %3, %15 : vector<16x128xi32>
      %17 = vector.broadcast %cst : f32 to vector<16x128xf32>
      %18 = arith.select %16, %4, %17 : vector<16x128xi1>, vector<16x128xf32>
      %cst_6 = arith.constant dense<0xFF800000> : vector<128xf32>
      %19 = vector.multi_reduction <maximumf>, %18, %cst_6 [0] : vector<16x128xf32> to vector<128xf32>
      %20 = vector.shape_cast %19 : vector<128xf32> to vector<1x128xf32>
      %c8_i32_7 = arith.constant 8 : i32
      %21 = arith.muli %arg6, %c8_i32_7 : i32
      %c1_i32_8 = arith.constant 1 : i32
      %22 = arith.addi %21, %c1_i32_8 : i32
      %23 = vector.broadcast %22 : i32 to vector<16x128xi32>
      %24 = arith.cmpi eq, %3, %23 : vector<16x128xi32>
      %25 = vector.broadcast %cst : f32 to vector<16x128xf32>
      %26 = arith.select %24, %4, %25 : vector<16x128xi1>, vector<16x128xf32>
      %cst_9 = arith.constant dense<0xFF800000> : vector<128xf32>
      %27 = vector.multi_reduction <maximumf>, %26, %cst_9 [0] : vector<16x128xf32> to vector<128xf32>
      %28 = vector.shape_cast %27 : vector<128xf32> to vector<1x128xf32>
      %c8_i32_10 = arith.constant 8 : i32
      %29 = arith.muli %arg6, %c8_i32_10 : i32
      %c2_i32 = arith.constant 2 : i32
      %30 = arith.addi %29, %c2_i32 : i32
      %31 = vector.broadcast %30 : i32 to vector<16x128xi32>
      %32 = arith.cmpi eq, %3, %31 : vector<16x128xi32>
      %33 = vector.broadcast %cst : f32 to vector<16x128xf32>
      %34 = arith.select %32, %4, %33 : vector<16x128xi1>, vector<16x128xf32>
      %cst_11 = arith.constant dense<0xFF800000> : vector<128xf32>
      %35 = vector.multi_reduction <maximumf>, %34, %cst_11 [0] : vector<16x128xf32> to vector<128xf32>
      %36 = vector.shape_cast %35 : vector<128xf32> to vector<1x128xf32>
      %c8_i32_12 = arith.constant 8 : i32
      %37 = arith.muli %arg6, %c8_i32_12 : i32
      %c3_i32 = arith.constant 3 : i32
      %38 = arith.addi %37, %c3_i32 : i32
      %39 = vector.broadcast %38 : i32 to vector<16x128xi32>
      %40 = arith.cmpi eq, %3, %39 : vector<16x128xi32>
      %41 = vector.broadcast %cst : f32 to vector<16x128xf32>
      %42 = arith.select %40, %4, %41 : vector<16x128xi1>, vector<16x128xf32>
      %cst_13 = arith.constant dense<0xFF800000> : vector<128xf32>
      %43 = vector.multi_reduction <maximumf>, %42, %cst_13 [0] : vector<16x128xf32> to vector<128xf32>
      %44 = vector.shape_cast %43 : vector<128xf32> to vector<1x128xf32>
      %c8_i32_14 = arith.constant 8 : i32
      %45 = arith.muli %arg6, %c8_i32_14 : i32
      %c4_i32 = arith.constant 4 : i32
      %46 = arith.addi %45, %c4_i32 : i32
      %47 = vector.broadcast %46 : i32 to vector<16x128xi32>
      %48 = arith.cmpi eq, %3, %47 : vector<16x128xi32>
      %49 = vector.broadcast %cst : f32 to vector<16x128xf32>
      %50 = arith.select %48, %4, %49 : vector<16x128xi1>, vector<16x128xf32>
      %cst_15 = arith.constant dense<0xFF800000> : vector<128xf32>
      %51 = vector.multi_reduction <maximumf>, %50, %cst_15 [0] : vector<16x128xf32> to vector<128xf32>
      %52 = vector.shape_cast %51 : vector<128xf32> to vector<1x128xf32>
      %c8_i32_16 = arith.constant 8 : i32
      %53 = arith.muli %arg6, %c8_i32_16 : i32
      %c5_i32 = arith.constant 5 : i32
      %54 = arith.addi %53, %c5_i32 : i32
      %55 = vector.broadcast %54 : i32 to vector<16x128xi32>
      %56 = arith.cmpi eq, %3, %55 : vector<16x128xi32>
      %57 = vector.broadcast %cst : f32 to vector<16x128xf32>
      %58 = arith.select %56, %4, %57 : vector<16x128xi1>, vector<16x128xf32>
      %cst_17 = arith.constant dense<0xFF800000> : vector<128xf32>
      %59 = vector.multi_reduction <maximumf>, %58, %cst_17 [0] : vector<16x128xf32> to vector<128xf32>
      %60 = vector.shape_cast %59 : vector<128xf32> to vector<1x128xf32>
      %c8_i32_18 = arith.constant 8 : i32
      %61 = arith.muli %arg6, %c8_i32_18 : i32
      %c6_i32 = arith.constant 6 : i32
      %62 = arith.addi %61, %c6_i32 : i32
      %63 = vector.broadcast %62 : i32 to vector<16x128xi32>
      %64 = arith.cmpi eq, %3, %63 : vector<16x128xi32>
      %65 = vector.broadcast %cst : f32 to vector<16x128xf32>
      %66 = arith.select %64, %4, %65 : vector<16x128xi1>, vector<16x128xf32>
      %cst_19 = arith.constant dense<0xFF800000> : vector<128xf32>
      %67 = vector.multi_reduction <maximumf>, %66, %cst_19 [0] : vector<16x128xf32> to vector<128xf32>
      %68 = vector.shape_cast %67 : vector<128xf32> to vector<1x128xf32>
      %c8_i32_20 = arith.constant 8 : i32
      %69 = arith.muli %arg6, %c8_i32_20 : i32
      %c7_i32 = arith.constant 7 : i32
      %70 = arith.addi %69, %c7_i32 : i32
      %71 = vector.broadcast %70 : i32 to vector<16x128xi32>
      %72 = arith.cmpi eq, %3, %71 : vector<16x128xi32>
      %73 = vector.broadcast %cst : f32 to vector<16x128xf32>
      %74 = arith.select %72, %4, %73 : vector<16x128xi1>, vector<16x128xf32>
      %cst_21 = arith.constant dense<0xFF800000> : vector<128xf32>
      %75 = vector.multi_reduction <maximumf>, %74, %cst_21 [0] : vector<16x128xf32> to vector<128xf32>
      %76 = vector.shape_cast %75 : vector<128xf32> to vector<1x128xf32>
      %77 = tpu.concatenate %20, %28, %36, %44, %52, %60, %68, %76 in 0 : vector<1x128xf32>, vector<1x128xf32>, vector<1x128xf32>, vector<1x128xf32>, vector<1x128xf32>, vector<1x128xf32>, vector<1x128xf32>, vector<1x128xf32> -> vector<8x128xf32>
      %78 = arith.index_cast %12 : i32 to index
      %c0_22 = arith.constant 0 : index
      %79 = vector.load %arg5[%78, %c0_22] : memref<32x128xf32, #tpu.memory_space<vmem>>, vector<8x128xf32>
      %80 = arith.maximumf %79, %77 : vector<8x128xf32>
      %81 = arith.index_cast %12 : i32 to index
      %c0_23 = arith.constant 0 : index
      %82 = vector.load %arg5[%81, %c0_23] : memref<32x128xf32, #tpu.memory_space<vmem>>, vector<8x128xf32>
      tpu.vector_store %arg5[%81, %c0_23], %80 {strides = array<i32>} : memref<32x128xf32, #tpu.memory_space<vmem>>, vector<8x128xf32>,
    }
    return
  }
  func.func @transform_0(%arg0: i32, %arg1: memref<1xi32, #tpu.memory_space<smem>>, %arg2: memref<1xi32, #tpu.memory_space<smem>>) -> (i32, i32) {
    %c0_i32 = arith.constant 0 : i32
    %c0_i32_0 = arith.constant 0 : i32
    return %arg0, %c0_i32 : i32, i32
  }
  func.func @transform_1(%arg0: i32, %arg1: memref<1xi32, #tpu.memory_space<smem>>, %arg2: memref<1xi32, #tpu.memory_space<smem>>) -> (i32, i32) {
    %c0_i32 = arith.constant 0 : i32
    %c0_i32_0 = arith.constant 0 : i32
    return %arg0, %c0_i32 : i32, i32
  }
  func.func @transform_2(%arg0: i32, %arg1: memref<1xi32, #tpu.memory_space<smem>>, %arg2: memref<1xi32, #tpu.memory_space<smem>>) -> (i32, i32) {
    %c0_i32 = arith.constant 0 : i32
    %c0_i32_0 = arith.constant 0 : i32
    %c0_i32_1 = arith.constant 0 : i32
    return %c0_i32, %c0_i32_0 : i32, i32
  }
}

</mosaic_0001>

<bundles_post_ra>
// kernel: tpu_custom_call.1
= control target key start
LH: loop header
LB: loop body
LE: loop exit
PB: predicated region body
PF: predicated region fallthrough
CT: control target
= control target key end

     0   :  { %11 = vsyncpa [#allocation6], 0  ;;  %s442_s0 = inlined_call_operand.<no memory space> [shape: s32[1], index: 0, kind: input, shape index: {}]   ;;  %s443_s1 = inlined_call_operand.<no memory space> [shape: s32[1], index: 1, kind: input, shape index: {}]   ;;  %s444_s2 = inlined_call_operand.hbm [shape: s32[16,128], index: 2, kind: input, shape index: {}]   ;;  %s445_s3 = inlined_call_operand.hbm [shape: f32[16,128], index: 3, kind: input, shape index: {}]   ;;  %s446_s4 = inlined_call_operand.hbm [shape: f32[32,128], index: 4, kind: output, shape index: {}]  }
   0x1   :  { %12 = vsyncpa [#allocation9], 0 }
   0x2   :  { %13 = vsyncpa [#allocation7], 0  ;;  %s18_s17 = sshll.u32 %s444_s2, 4  ;;  %s318_s18 = smov [#allocation5]   ;;  %s19_s17 = int_to_ptr.hbm [resolvable:$true] %s18_s17 }
   0x3   :  { %s20_s19 = sshll.u32 %s318_s18, 4  ;;  %s31_s22 = sshll.u32 %s445_s3, 4  ;;  %s21_s19 = int_to_ptr.vmem [resolvable:$true] %s20_s19  ;;  %s32_s22 = int_to_ptr.hbm [resolvable:$true] %s31_s22 }
   0x4   :  { %s319_s23 = smov 128   ;;  %s320_s24 = smov 8  }
   0x5   :  { %26 = dma.hbm_to_vmem [thread:$0]  %s19_s17, 256, %s21_s19, [#allocation6], %s319_s23, %s319_s23, %s320_s24  }
   0x6   :  { %s321_s25 = smov [#allocation8]  }
   0x7   :  { %s33_s26 = sshll.u32 %s321_s25, 4  ;;  %s34_s26 = int_to_ptr.vmem [resolvable:$true] %s33_s26 }
   0x8   :  { %39 = dma.hbm_to_vmem [thread:$0]  %s32_s22, 256, %s34_s26, [#allocation9], %s319_s23, %s319_s23, %s320_s24  }
   0x9   :  { %308 = dma.done.wait [#allocation6], 256  }
   0xa   :  { %309 = vsyncadd [#allocation6], 4294967040 }
   0xb   :  { %310 = dma.done.wait [#allocation9], 256  }
   0xc   :  { %311 = vsyncadd [#allocation9], 4294967040  ;;  %v322_v0 = vmov -inf   ;;  %v361_v1 = vld [vmem:[#allocation5] sm:$0xff]  ;;  %v363_v2 = vld [vmem:[#allocation5 + $0x8] sm:$0xff]  ;;  %p213_p0 = scmp.ge.s32.totalorder %s442_s0, %s443_s1 }
   0xd   :  { %52 = vst [vmem:[#allocation10] sm:$0xff] %v322_v0  ;;  %v365_v3 = vld [vmem:[#allocation8] sm:$0xff]  ;;  %v367_v4 = vld [vmem:[#allocation8 + $0x8] sm:$0xff] }
   0xe   :  { %53 = vst [vmem:[#allocation10 + $0x8] sm:$0xff] %v322_v0  ;;  %214 = sbr.rel (%p213_p0) target bundleno = 59 (0x3b), region = 42 }
   0xf   :  { %54 = vst [vmem:[#allocation10 + $0x10] sm:$0xff] %v322_v0 }
  0x10   :  { %55 = vst [vmem:[#allocation10 + $0x18] sm:$0xff] %v322_v0 }
  0x13 LB: > { %s384_s5 = sshll.u32 %s316_s0, 3  ;;  %vm172_vm10 = vcmask 1040384   ;;  %vm174_vm12 = vcmask 1041408   ;;  %vm176_vm14 = vcmask 1042432   ;;  %s65_s0 = sadd.s32 1, %s316_s0   ;;  %s316_s0 = sphi %s442_s0, %s65_s0  }
  0x14   : > { %v69_v5 = vstv %s384_s5  ;;  %s81_s6 = sadd.s32 1, %s384_s5  ;;  %s94_s7 = sadd.s32 2, %s384_s5 }
  0x15   : > { %vm70_vm0 = vcmp.eq.s32.totalorder %v361_v1, %v69_v5  ;;  %vm71_vm1 = vcmp.eq.s32.totalorder %v363_v2, %v69_v5  ;;  %v82_v6 = vstv %s81_s6  ;;  %v95_v7 = vstv %s94_s7  ;;  %s107_s8 = sadd.s32 3, %s384_s5  ;;  %s120_s9 = sadd.s32 4, %s384_s5 }
  0x16   : > { %v72_v8 = vsel %vm70_vm0, %v365_v3, -inf  ;;  %v73_v9 = vsel %vm71_vm1, %v367_v4, -inf  ;;  %vm83_vm2 = vcmp.eq.s32.totalorder %v361_v1, %v82_v6  ;;  %vm84_vm3 = vcmp.eq.s32.totalorder %v363_v2, %v82_v6  ;;  %s133_s10 = sadd.s32 5, %s384_s5  ;;  %s146_s11 = sadd.s32 6, %s384_s5 }
  0x17   : > { %v74_v10 = vmax.f32 %v72_v8, %v73_v9  ;;  %v85_v11 = vsel %vm83_vm2, %v365_v3, -inf  ;;  %v86_v12 = vsel %vm84_vm3, %v367_v4, -inf  ;;  %vm96_vm4 = vcmp.eq.s32.totalorder %v361_v1, %v95_v7  ;;  %s159_s12 = sadd.s32 7, %s384_s5  ;;  %s186_s13 = scalar_lea.vmem [#allocation10], %s384_s5 }
  0x18   : > { %v87_v13 = vmax.f32 %v85_v11, %v86_v12  ;;  %vm97_vm5 = vcmp.eq.s32.totalorder %v363_v2, %v95_v7  ;;  %v98_v14 = vsel %vm96_vm4, %v365_v3, -inf  ;;  %v108_v15 = vstv %s107_s8  ;;  %p64_p1 = scmp.ge.s32.totalorder %s65_s0, %s443_s1 }
  0x19   : > { %v75_v16 = vrot.slane %v74_v10, 4  ;;  %v99_v17 = vsel %vm97_vm5, %v367_v4, -inf  ;;  %vm109_vm6 = vcmp.eq.s32.totalorder %v361_v1, %v108_v15  ;;  %vm110_vm7 = vcmp.eq.s32.totalorder %v363_v2, %v108_v15 }
  0x1a   : > { %v88_v18 = vrot.slane %v87_v13, 4  ;;  %v100_v19 = vmax.f32 %v98_v14, %v99_v17  ;;  %v111_v20 = vsel %vm109_vm6, %v365_v3, -inf  ;;  %v112_v21 = vsel %vm110_vm7, %v367_v4, -inf }
  0x1b   : > { %v76_v22 = vmax.f32 %v74_v10, %v75_v16  ;;  %v113_v23 = vmax.f32 %v111_v20, %v112_v21  ;;  %v121_v24 = vstv %s120_s9  ;;  %v134_v25 = vstv %s133_s10 }
  0x1c   : > { %v89_v26 = vmax.f32 %v87_v13, %v88_v18  ;;  %v101_v27 = vrot.slane %v100_v19, 4  ;;  %vm122_vm8 = vcmp.eq.s32.totalorder %v361_v1, %v121_v24  ;;  %vm123_vm9 = vcmp.eq.s32.totalorder %v363_v2, %v121_v24 }
  0x1d   : > { %v77_v28 = vrot.slane %v76_v22, 2  ;;  %v114_v29 = vrot.slane %v113_v23, 4  ;;  %v124_v30 = vsel %vm122_vm8, %v365_v3, -inf  ;;  %v125_v31 = vsel %vm123_vm9, %v367_v4, -inf }
  0x1e   : > { %v90_v32 = vrot.slane %v89_v26, 2  ;;  %v102_v33 = vmax.f32 %v100_v19, %v101_v27  ;;  %v126_v34 = vmax.f32 %v124_v30, %v125_v31  ;;  %vm135_vm11 = vcmp.eq.s32.totalorder %v361_v1, %v134_v25  ;;  %v187_v31 = vld [vmem:[%s186_s13] sm:$0xff] }
  0x1f   : > { %v78_v35 = vmax.f32 %v76_v22, %v77_v28  ;;  %v115_v36 = vmax.f32 %v113_v23, %v114_v29  ;;  %vm136_vm13 = vcmp.eq.s32.totalorder %v363_v2, %v134_v25  ;;  %v137_v37 = vsel %vm135_vm11, %v365_v3, -inf }
  0x20   : > { %v91_v38 = vmax.f32 %v89_v26, %v90_v32  ;;  %v103_v39 = vrot.slane %v102_v33, 2  ;;  %v127_v40 = vrot.slane %v126_v34, 4  ;;  %v138_v41 = vsel %vm136_vm13, %v367_v4, -inf }
  0x21   : > { %v79_v42 = vrot.slane %v78_v35, 1  ;;  %v116_v43 = vrot.slane %v115_v36, 2  ;;  %v139_v44 = vmax.f32 %v137_v37, %v138_v41  ;;  %v147_v45 = vstv %s146_s11 }
  0x22   : > { %v92_v46 = vrot.slane %v91_v38, 1  ;;  %v104_v47 = vmax.f32 %v102_v33, %v103_v39  ;;  %v128_v48 = vmax.f32 %v126_v34, %v127_v40  ;;  %vm148_vm15 = vcmp.eq.s32.totalorder %v361_v1, %v147_v45 }
  0x23   : > { %v80_v49 = vmax.f32 %v78_v35, %v79_v42  ;;  %v117_v50 = vmax.f32 %v115_v36, %v116_v43  ;;  %v140_v51 = vrot.slane %v139_v44, 4  ;;  %vm149_vm0 = vcmp.eq.s32.totalorder %v363_v2, %v147_v45 }
  0x24   : > { %v93_v52 = vmax.f32 %v91_v38, %v92_v46  ;;  %v105_v53 = vrot.slane %v104_v47, 1  ;;  %v129_v54 = vrot.slane %v128_v48, 2  ;;  %v150_v55 = vsel %vm148_vm15, %v365_v3, -inf }
  0x25   : > { %v118_v56 = vrot.slane %v117_v50, 1  ;;  %v141_v57 = vmax.f32 %v139_v44, %v140_v51  ;;  %v151_v58 = vsel %vm149_vm0, %v367_v4, -inf  ;;  %v160_v59 = vstv %s159_s12 }
  0x26   : > { %v106_v60 = vmax.f32 %v104_v47, %v105_v53  ;;  %v130_v61 = vmax.f32 %v128_v48, %v129_v54  ;;  %v152_v62 = vmax.f32 %v150_v55, %v151_v58  ;;  %vm161_vm1 = vcmp.eq.s32.totalorder %v361_v1, %v160_v59 }
  0x27   : > { %v119_v63 = vmax.f32 %v117_v50, %v118_v56  ;;  %v142_v0 = vrot.slane %v141_v57, 2  ;;  %vm162_vm2 = vcmp.eq.s32.totalorder %v363_v2, %v160_v59  ;;  %v163_v5 = vsel %vm161_vm1, %v365_v3, -inf }
  0x28   : > { %v131_v6 = vrot.slane %v130_v61, 1  ;;  %v153_v7 = vrot.slane %v152_v62, 4  ;;  %v164_v8 = vsel %vm162_vm2, %v367_v4, -inf  ;;  %v173_v9 = vsel %vm172_vm10, %v80_v49, %v93_v52 }
  0x29   : > { %v143_v10 = vmax.f32 %v141_v57, %v142_v0  ;;  %v165_v11 = vmax.f32 %v163_v5, %v164_v8  ;;  %v175_v12 = vsel %vm174_vm12, %v173_v9, %v106_v60  ;;  %vm178_vm3 = vcmask 1043456  }
  0x2a   : > { %v132_v13 = vmax.f32 %v130_v61, %v131_v6  ;;  %v154_v14 = vmax.f32 %v152_v62, %v153_v7  ;;  %v177_v17 = vsel %vm176_vm14, %v175_v12, %v119_v63  ;;  %vm180_vm4 = vcmask 1044480  }
  0x2b   : > { %v144_v15 = vrot.slane %v143_v10, 1  ;;  %v166_v16 = vrot.slane %v165_v11, 4  ;;  %vm182_vm5 = vcmask 1045504   ;;  %vm184_vm6 = vcmask 1046528  }
  0x2c   : > { %v155_v18 = vrot.slane %v154_v14, 2  ;;  %v179_v22 = vsel %vm178_vm3, %v177_v17, %v132_v13 }
  0x2d   : > { %v145_v19 = vmax.f32 %v143_v10, %v144_v15  ;;  %v167_v20 = vmax.f32 %v165_v11, %v166_v16 }
  0x2e   : > { %v156_v21 = vmax.f32 %v154_v14, %v155_v18 }
  0x2f   : > { %v168_v23 = vrot.slane %v167_v20, 2  ;;  %v181_v26 = vsel %vm180_vm4, %v179_v22, %v145_v19 }
  0x30   : > { %v157_v24 = vrot.slane %v156_v21, 1 }
  0x31   : > { %v169_v25 = vmax.f32 %v167_v20, %v168_v23 }
  0x32   : > { %v158_v27 = vmax.f32 %v156_v21, %v157_v24 }
  0x33   : > { %v170_v28 = vrot.slane %v169_v25, 1 }
  0x34   : > { %v183_v29 = vsel %vm182_vm5, %v181_v26, %v158_v27 }
  0x35   : > { %v171_v30 = vmax.f32 %v169_v25, %v170_v28 }
  0x36   :  { %67 = sbr.rel (!%p64_p1) target bundleno = 19 (0x13), region = 48 }
  0x37   : > { %v185_v32 = vsel %vm184_vm6, %v183_v29, %v171_v30 }
  0x38   : > { %v188_v33 = vmax.f32 %v187_v31, %v185_v32 }
  0x3a   : > { %189 = vst [vmem:[%s186_s13] sm:$0xff] %v188_v33 }
  0x3b PF:  { %s196_s18 = sshll.u32 %s446_s4, 4  ;;  %s323_s19 = smov [#allocation10]   ;;  %s197_s18 = int_to_ptr.hbm [resolvable:$true] %s196_s18 }
  0x3c   :  { %s194_s20 = sshll.u32 %s323_s19, 4  ;;  %s195_s20 = int_to_ptr.vmem [resolvable:$true] %s194_s20 }
  0x3d   :  { %202 = dma.vmem_to_hbm [thread:$0]  %s195_s20, 512, %s197_s18, [#allocation7], %s319_s23, %s319_s23, %s320_s24  }
  0x3e   :  { %312 = dma.done.wait [#allocation7], 512  }
  0x3f   :  { %313 = vsyncadd [#allocation7], 4294966784 }
  0x40   :  { %207 = vsyncpa [#allocation6], 1 }
  0x41   :  { %208 = vsyncpa [#allocation9], 1 }
  0x42   :  { %209 = vsyncpa [#allocation7], 1 }

</bundles_post_ra>
